<compile_context>
chip_gen: v7x
topology: tpu7x:2x2x1
jax: 0.10.0
libtpu: 0.0.40
codegen_flags: <defaults>
</compile_context>

<pallas_src>
import numpy as np

import jax
import jax.numpy as jnp
from jax import lax
from jax.experimental import pallas as pl
from jax.experimental.pallas import tpu as pltpu

_BIG_NORM = 1e30  # exp(-1e30) == 0.0 in f32 -> padded rows/cols contribute nothing.


def _round_up(a, m):
    return (a + m - 1) // m * m


def _pick_tile(n):
    """Square Gram tile: multiple of 128 (lane-dense), capped at 512."""
    n128 = _round_up(max(int(n), 1), 128)
    tile = 128
    for cand in (256, 512):
        # Only take a bigger tile if it does not inflate padding by > ~25%.
        if cand <= n128 and _round_up(n, cand) <= n128 + n128 // 4:
            tile = cand
    return tile


def _hsic_kernel(bi_ref, bj_ref,                       # scalar-prefetch (unused in body)
                 xb_ref, yb_ref, xt_ref, yt_ref,       # (tile,D) (tile,C) (D,tile) (C,tile)
                 xnr_ref, ynr_ref, xnc_ref, ync_ref,   # (1,tile) col-norms, (tile,1) row-norms
                 lane_ref, sub_ref):                   # (3,tile) and (tile,2) partial stats
    del bi_ref, bj_ref
    dims = (((1,), (0,)), ((), ()))                    # natural (M,K)@(K,N) for the MXU

    x_inner = lax.dot_general(xb_ref[...], xt_ref[...], dims,
                              preferred_element_type=jnp.float32)   # (tile, tile)
    y_inner = lax.dot_general(yb_ref[...], yt_ref[...], dims,
                              preferred_element_type=jnp.float32)   # (tile, tile)

    # gamma pre-folded: exponent = xs_i.xs_j - 0.5|xs_i|^2 - 0.5|xs_j|^2, xs = x/sigma.
    kx = jnp.exp(x_inner - xnc_ref[...] - xnr_ref[...])
    ky = jnp.exp(y_inner - ync_ref[...] - ynr_ref[...])
    p = kx * ky

    # Lane-oriented (sublane-axis) reductions: column sums of this block.
    lane_ref[0:1, :] = jnp.sum(kx, axis=0, keepdims=True)
    lane_ref[1:2, :] = jnp.sum(ky, axis=0, keepdims=True)
    lane_ref[2:3, :] = jnp.sum(p, axis=0, keepdims=True)
    # Sublane-oriented (lane-axis) reductions: row sums of this block.
    sub_ref[:, 0:1] = jnp.sum(kx, axis=1, keepdims=True)
    sub_ref[:, 1:2] = jnp.sum(ky, axis=1, keepdims=True)


def hsic_loss(x, y, *, sigma=1.0, mean_sub=False, tile=None):
    """Pallas implementation of HSICLoss.forward(x, y)."""
    assert x.ndim == 2 and y.ndim == 2 and x.shape[0] == y.shape[0]
    n = x.shape[0]

    xs = x.astype(jnp.float32)
    ys = y.astype(jnp.float32)
    if mean_sub:
        # Faithful to the PyTorch expression (division binds tighter than '-').
        xs = xs - jnp.mean(xs, axis=0) / (jnp.std(xs, axis=0, ddof=1) + 1e-12)
        ys = ys - jnp.mean(ys, axis=0)

    # Fold gamma = 1/(2 sigma^2):  K = exp(xs_i.xs_j - 0.5|xs_i|^2 - 0.5|xs_j|^2).
    inv_sigma = 1.0 / float(sigma)
    xs = xs * inv_sigma
    ys = ys * inv_sigma

    if tile is None:
        tile = _pick_tile(n)
    tile = max(128, _round_up(min(int(tile), _round_up(n, 128)), 128))
    n_pad = _round_up(n, tile)

    if n_pad != n:
        pad = n_pad - n
        xs = jnp.pad(xs, ((0, pad), (0, 0)))
        ys = jnp.pad(ys, ((0, pad), (0, 0)))

    # Half squared norms (gamma folded in); padded entries -> huge so exp -> 0.
    xn = 0.5 * jnp.sum(xs * xs, axis=1)
    yn = 0.5 * jnp.sum(ys * ys, axis=1)
    if n_pad != n:
        padded = jnp.arange(n_pad) >= n
        xn = jnp.where(padded, _BIG_NORM, xn)
        yn = jnp.where(padded, _BIG_NORM, yn)

    xt = xs.T                                   # (D, Np) resident MXU RHS (lane-dense N)
    yt = ys.T                                   # (C, Np)
    xn_lane = xn[None, :]                       # (1, Np)  column norms
    yn_lane = yn[None, :]
    xn_sub = xn[:, None]                        # (Np, 1)  row norms
    yn_sub = yn[:, None]

    d = xs.shape[1]
    c = ys.shape[1]
    nb = n_pad // tile

    # Upper-triangular block-pair enumeration (row-major so the row block is reused).
    pairs = [(i, j) for i in range(nb) for j in range(i, nb)]
    t_steps = len(pairs)
    bi_arr = jnp.asarray(np.array([p[0] for p in pairs], dtype=np.int32))
    bj_arr = jnp.asarray(np.array([p[1] for p in pairs], dtype=np.int32))

    grid_spec = pltpu.PrefetchScalarGridSpec(
        num_scalar_prefetch=2,
        grid=(t_steps,),
        in_specs=[
            pl.BlockSpec((tile, d), lambda t, bi, bj: (bi[t], 0)),   # x row block
            pl.BlockSpec((tile, c), lambda t, bi, bj: (bi[t], 0)),   # y row block
            pl.BlockSpec((d, tile), lambda t, bi, bj: (0, bj[t])),   # xT col block
            pl.BlockSpec((c, tile), lambda t, bi, bj: (0, bj[t])),   # yT col block
            pl.BlockSpec((1, tile), lambda t, bi, bj: (0, bj[t])),   # |x|^2 cols
            pl.BlockSpec((1, tile), lambda t, bi, bj: (0, bj[t])),   # |y|^2 cols
            pl.BlockSpec((tile, 1), lambda t, bi, bj: (bi[t], 0)),   # |x|^2 rows
            pl.BlockSpec((tile, 1), lambda t, bi, bj: (bi[t], 0)),   # |y|^2 rows
        ],
        out_specs=(
            pl.BlockSpec((None, 3, tile), lambda t, bi, bj: (t, 0, 0)),
            pl.BlockSpec((None, tile, 2), lambda t, bi, bj: (t, 0, 0)),
        ),
    )

    lane_stats, sub_stats = pl.pallas_call(
        _hsic_kernel,
        out_shape=(jax.ShapeDtypeStruct((t_steps, 3, tile), jnp.float32),
                   jax.ShapeDtypeStruct((t_steps, tile, 2), jnp.float32)),
        grid_spec=grid_spec,
        compiler_params=pltpu.CompilerParams(
            # Each step writes its own output block -> no cross-step dependency,
            # so the block-pair axis can be split across TensorCores (v7x).
            dimension_semantics=("parallel",),
        ),
    )(bi_arr, bj_arr, xs, ys, xt, yt, xn_lane, yn_lane, xn_sub, yn_sub)

    # --- O(T * tile) reduction of per-block statistics (plain XLA, negligible) ---
    diag = (bi_arr == bj_arr)
    w = jnp.where(diag, 1.0, 2.0).astype(jnp.float32)          # double off-diag blocks
    s1 = jnp.sum(w * jnp.sum(lane_stats[:, 2, :], axis=-1))    # sum_ij Kx*Ky

    off = jnp.where(diag[:, None], 0.0, 1.0)                   # skip colsum of diag blocks
    rKx = jnp.zeros((nb, tile), jnp.float32)
    rKx = rKx.at[bi_arr].add(sub_stats[:, :, 0])               # rowsums  -> rows in block bi
    rKx = rKx.at[bj_arr].add(off * lane_stats[:, 0, :])        # colsums  -> rows in block bj
    rKy = jnp.zeros((nb, tile), jnp.float32)
    rKy = rKy.at[bi_arr].add(sub_stats[:, :, 1])
    rKy = rKy.at[bj_arr].add(off * lane_stats[:, 1, :])

    d2 = jnp.sum(rKx * rKy)                                    # <rowsum Kx, rowsum Ky>
    skx = jnp.sum(rKx)                                         # sum(Kx)
    sky = jnp.sum(rKy)                                         # sum(Ky)
    inv_n = jnp.float32(1.0 / n)
    return s1 - 2.0 * inv_n * d2 + inv_n * inv_n * skx * sky


def _reference_hsic(x, y, sigma=1.0, mean_sub=False):
    """Pure-JAX replica of the PyTorch HSICLoss.forward (explicit centering)."""
    x = x.astype(jnp.float32)
    y = y.astype(jnp.float32)
    if mean_sub:
        x = x - jnp.mean(x, axis=0) / (jnp.std(x, axis=0, ddof=1) + 1e-12)
        y = y - jnp.mean(y, axis=0)

    def gaussian(z):
        inner = z @ z.T
        nrm = jnp.diag(inner)
        dist = nrm[None, :] + nrm[:, None] - 2.0 * inner
        return jnp.exp(-dist / (2.0 * float(sigma) ** 2))

    def center(k):
        return (k - jnp.mean(k, axis=0, keepdims=True)
                - jnp.mean(k, axis=1, keepdims=True) + jnp.mean(k))

    gx = center(gaussian(x))
    gy = center(gaussian(y))
    return jnp.trace(gx @ gy)


if __name__ == "__main__":
    key = jax.random.PRNGKey(0)
    k1, k2, k3, k4, k5, k6 = jax.random.split(key, 6)

    # Small shapes consistent with HSICLoss.forward: x = features, y = softmax preds.
    B, D, C = 8, 32, 10
    x = jax.random.normal(k1, (B, D), dtype=jnp.float32)
    y = jax.nn.softmax(jax.random.normal(k2, (B, C), dtype=jnp.float32), axis=1)
    loss = hsic_loss(x, y, sigma=1.0)
    jax.block_until_ready(loss)
    ref = _reference_hsic(x, y, sigma=1.0)
    assert jnp.allclose(loss, ref, atol=1e-4, rtol=1e-4), (loss, ref)

    # Ragged batch (heavy padding inside a single block) + non-unit sigma.
    B2 = 20
    x2 = 0.5 * jax.random.normal(k3, (B2, D), dtype=jnp.float32)
    y2 = jax.nn.softmax(2.0 * jax.random.normal(k4, (B2, C), dtype=jnp.float32), axis=1)
    loss2 = hsic_loss(x2, y2, sigma=2.0)
    jax.block_until_ready(loss2)
    ref2 = _reference_hsic(x2, y2, sigma=2.0)
    assert jnp.allclose(loss2, ref2, atol=1e-3, rtol=1e-3), (loss2, ref2)

    # Multi-block path: symmetric upper-triangle enumeration, off-diagonal doubling,
    # padding, and the wrapper-side scatter reduction (nb=3, T=6 blocks).
    B3, D3 = 300, 16
    x3 = jax.random.normal(k5, (B3, D3), dtype=jnp.float32)
    y3 = jax.nn.softmax(jax.random.normal(k6, (B3, C), dtype=jnp.float32), axis=1)
    loss3 = hsic_loss(x3, y3, sigma=1.5, tile=128)
    jax.block_until_ready(loss3)
    ref3 = _reference_hsic(x3, y3, sigma=1.5)
    assert jnp.allclose(loss3, ref3, atol=1e-1, rtol=1e-2), (loss3, ref3)

    # mean_sub branch (PyTorch operator-precedence-faithful).
    loss4 = hsic_loss(x, y, sigma=1.0, mean_sub=True)
    jax.block_until_ready(loss4)
    ref4 = _reference_hsic(x, y, sigma=1.0, mean_sub=True)
    assert jnp.allclose(loss4, ref4, atol=1e-4, rtol=1e-4), (loss4, ref4)

    print("KERNEL_OK")
</pallas_src>

<mosaic_0001>
module attributes {stable_mosaic.version = 11 : i64} {
  func.func @_hsic_kernel(%arg0: i32, %arg1: memref<1xi32, #tpu.memory_space<smem>>, %arg2: memref<1xi32, #tpu.memory_space<smem>>, %arg3: memref<128x32xf32, #tpu.memory_space<vmem>>, %arg4: memref<128x10xf32, #tpu.memory_space<vmem>>, %arg5: memref<32x128xf32, #tpu.memory_space<vmem>>, %arg6: memref<10x128xf32, #tpu.memory_space<vmem>>, %arg7: memref<1x128xf32, #tpu.memory_space<vmem>>, %arg8: memref<1x128xf32, #tpu.memory_space<vmem>>, %arg9: memref<128x1xf32, #tpu.memory_space<vmem>>, %arg10: memref<128x1xf32, #tpu.memory_space<vmem>>, %arg11: memref<1x3x128xf32, #tpu.memory_space<vmem>>, %arg12: memref<1x128x2xf32, #tpu.memory_space<vmem>>) attributes {dimension_semantics = [#tpu.dimension_semantics<parallel>], iteration_bounds = array<i64: 1>, scalar_prefetch = 2 : i64, scratch_operands = 0 : i64, tpu.core_type = #tpu.core_type<tc>, window_params = [{transform_indices = @transform_0, window_bounds = array<i64: 128, 32>}, {transform_indices = @transform_1, window_bounds = array<i64: 128, 10>}, {transform_indices = @transform_2, window_bounds = array<i64: 32, 128>}, {transform_indices = @transform_3, window_bounds = array<i64: 10, 128>}, {transform_indices = @transform_4, window_bounds = array<i64: 1, 128>}, {transform_indices = @transform_5, window_bounds = array<i64: 1, 128>}, {transform_indices = @transform_6, window_bounds = array<i64: 128, 1>}, {transform_indices = @transform_7, window_bounds = array<i64: 128, 1>}, {transform_indices = @transform_8, window_bounds = array<i64: 1, 3, 128>}, {transform_indices = @transform_9, window_bounds = array<i64: 1, 128, 2>}]} {
    %c0 = arith.constant 0 : index
    %c0_0 = arith.constant 0 : index
    %0 = vector.load %arg3[%c0, %c0_0] : memref<128x32xf32, #tpu.memory_space<vmem>>, vector<128x32xf32>
    %c0_1 = arith.constant 0 : index
    %c0_2 = arith.constant 0 : index
    %1 = vector.load %arg5[%c0_1, %c0_2] : memref<32x128xf32, #tpu.memory_space<vmem>>, vector<32x128xf32>
    %cst = arith.constant dense<0.000000e+00> : vector<128x128xf32>
    %2 = tpu.matmul %0, %1, %cst {dimension_numbers = #tpu.dot_dimension_numbers<[1], [0], [0], [1], [0, 0, 1, 1], [], []>} : vector<128x32xf32>, vector<32x128xf32>, vector<128x128xf32> -> vector<128x128xf32>
    %c0_3 = arith.constant 0 : index
    %c0_4 = arith.constant 0 : index
    %3 = vector.load %arg4[%c0_3, %c0_4] : memref<128x10xf32, #tpu.memory_space<vmem>>, vector<128x10xf32>
    %c0_5 = arith.constant 0 : index
    %c0_6 = arith.constant 0 : index
    %4 = vector.load %arg6[%c0_5, %c0_6] : memref<10x128xf32, #tpu.memory_space<vmem>>, vector<10x128xf32>
    %cst_7 = arith.constant dense<0.000000e+00> : vector<128x128xf32>
    %5 = tpu.matmul %3, %4, %cst_7 {dimension_numbers = #tpu.dot_dimension_numbers<[1], [0], [0], [1], [0, 0, 1, 1], [], []>} : vector<128x10xf32>, vector<10x128xf32>, vector<128x128xf32> -> vector<128x128xf32>
    %c0_8 = arith.constant 0 : index
    %c0_9 = arith.constant 0 : index
    %6 = vector.load %arg9[%c0_8, %c0_9] : memref<128x1xf32, #tpu.memory_space<vmem>>, vector<128x1xf32>
    %7 = vector.broadcast %6 : vector<128x1xf32> to vector<128x128xf32>
    %8 = arith.subf %2, %7 : vector<128x128xf32>
    %c0_10 = arith.constant 0 : index
    %c0_11 = arith.constant 0 : index
    %9 = vector.load %arg7[%c0_10, %c0_11] : memref<1x128xf32, #tpu.memory_space<vmem>>, vector<1x128xf32>
    %10 = vector.broadcast %9 : vector<1x128xf32> to vector<128x128xf32>
    %11 = arith.subf %8, %10 : vector<128x128xf32>
    %12 = math.exp %11 : vector<128x128xf32>
    %c0_12 = arith.constant 0 : index
    %c0_13 = arith.constant 0 : index
    %13 = vector.load %arg10[%c0_12, %c0_13] : memref<128x1xf32, #tpu.memory_space<vmem>>, vector<128x1xf32>
    %14 = vector.broadcast %13 : vector<128x1xf32> to vector<128x128xf32>
    %15 = arith.subf %5, %14 : vector<128x128xf32>
    %c0_14 = arith.constant 0 : index
    %c0_15 = arith.constant 0 : index
    %16 = vector.load %arg8[%c0_14, %c0_15] : memref<1x128xf32, #tpu.memory_space<vmem>>, vector<1x128xf32>
    %17 = vector.broadcast %16 : vector<1x128xf32> to vector<128x128xf32>
    %18 = arith.subf %15, %17 : vector<128x128xf32>
    %19 = math.exp %18 : vector<128x128xf32>
    %20 = arith.mulf %12, %19 : vector<128x128xf32>
    %cst_16 = arith.constant dense<0.000000e+00> : vector<128xf32>
    %21 = vector.multi_reduction <add>, %12, %cst_16 [0] : vector<128x128xf32> to vector<128xf32>
    %22 = vector.shape_cast %21 : vector<128xf32> to vector<1x128xf32>
    %c0_17 = arith.constant 0 : index
    %c0_18 = arith.constant 0 : index
    %c0_19 = arith.constant 0 : index
    %23 = vector.load %arg11[%c0_17, %c0_18, %c0_19] : memref<1x3x128xf32, #tpu.memory_space<vmem>>, vector<1x1x128xf32>
    %24 = vector.shape_cast %23 : vector<1x1x128xf32> to vector<1x128xf32>
    %25 = vector.shape_cast %22 : vector<1x128xf32> to vector<1x1x128xf32>
    tpu.vector_store %arg11[%c0_17, %c0_18, %c0_19], %25 {strides = array<i32>} : memref<1x3x128xf32, #tpu.memory_space<vmem>>, vector<1x1x128xf32>,
    %cst_20 = arith.constant dense<0.000000e+00> : vector<128xf32>
    %26 = vector.multi_reduction <add>, %19, %cst_20 [0] : vector<128x128xf32> to vector<128xf32>
    %27 = vector.shape_cast %26 : vector<128xf32> to vector<1x128xf32>
    %c0_21 = arith.constant 0 : index
    %c1 = arith.constant 1 : index
    %c0_22 = arith.constant 0 : index
    %28 = vector.load %arg11[%c0_21, %c1, %c0_22] : memref<1x3x128xf32, #tpu.memory_space<vmem>>, vector<1x1x128xf32>
    %29 = vector.shape_cast %28 : vector<1x1x128xf32> to vector<1x128xf32>
    %30 = vector.shape_cast %27 : vector<1x128xf32> to vector<1x1x128xf32>
    tpu.vector_store %arg11[%c0_21, %c1, %c0_22], %30 {strides = array<i32>} : memref<1x3x128xf32, #tpu.memory_space<vmem>>, vector<1x1x128xf32>,
    %cst_23 = arith.constant dense<0.000000e+00> : vector<128xf32>
    %31 = vector.multi_reduction <add>, %20, %cst_23 [0] : vector<128x128xf32> to vector<128xf32>
    %32 = vector.shape_cast %31 : vector<128xf32> to vector<1x128xf32>
    %c0_24 = arith.constant 0 : index
    %c2 = arith.constant 2 : index
    %c0_25 = arith.constant 0 : index
    %33 = vector.load %arg11[%c0_24, %c2, %c0_25] : memref<1x3x128xf32, #tpu.memory_space<vmem>>, vector<1x1x128xf32>
    %34 = vector.shape_cast %33 : vector<1x1x128xf32> to vector<1x128xf32>
    %35 = vector.shape_cast %32 : vector<1x128xf32> to vector<1x1x128xf32>
    tpu.vector_store %arg11[%c0_24, %c2, %c0_25], %35 {strides = array<i32>} : memref<1x3x128xf32, #tpu.memory_space<vmem>>, vector<1x1x128xf32>,
    %cst_26 = arith.constant dense<0.000000e+00> : vector<128xf32>
    %36 = vector.multi_reduction <add>, %12, %cst_26 [1] : vector<128x128xf32> to vector<128xf32>
    %37 = vector.shape_cast %36 : vector<128xf32> to vector<128x1xf32>
    %c0_27 = arith.constant 0 : index
    %c0_28 = arith.constant 0 : index
    %c0_29 = arith.constant 0 : index
    %38 = vector.load %arg12[%c0_27, %c0_28, %c0_29] : memref<1x128x2xf32, #tpu.memory_space<vmem>>, vector<1x128x1xf32>
    %39 = vector.shape_cast %38 : vector<1x128x1xf32> to vector<128x1xf32>
    %40 = vector.shape_cast %37 : vector<128x1xf32> to vector<1x128x1xf32>
    tpu.vector_store %arg12[%c0_27, %c0_28, %c0_29], %40 {strides = array<i32>} : memref<1x128x2xf32, #tpu.memory_space<vmem>>, vector<1x128x1xf32>,
    %cst_30 = arith.constant dense<0.000000e+00> : vector<128xf32>
    %41 = vector.multi_reduction <add>, %19, %cst_30 [1] : vector<128x128xf32> to vector<128xf32>
    %42 = vector.shape_cast %41 : vector<128xf32> to vector<128x1xf32>
    %c0_31 = arith.constant 0 : index
    %c0_32 = arith.constant 0 : index
    %c1_33 = arith.constant 1 : index
    %43 = vector.load %arg12[%c0_31, %c0_32, %c1_33] : memref<1x128x2xf32, #tpu.memory_space<vmem>>, vector<1x128x1xf32>
    %44 = vector.shape_cast %43 : vector<1x128x1xf32> to vector<128x1xf32>
    %45 = vector.shape_cast %42 : vector<128x1xf32> to vector<1x128x1xf32>
    tpu.vector_store %arg12[%c0_31, %c0_32, %c1_33], %45 {strides = array<i32>} : memref<1x128x2xf32, #tpu.memory_space<vmem>>, vector<1x128x1xf32>,
    return
  }
  func.func @transform_0(%arg0: i32, %arg1: memref<1xi32, #tpu.memory_space<smem>>, %arg2: memref<1xi32, #tpu.memory_space<smem>>) -> (i32, i32) {
    %0 = arith.index_cast %arg0 : i32 to index
    %1 = memref.load %arg1[%0] : memref<1xi32, #tpu.memory_space<smem>>
    %c0_i32 = arith.constant 0 : i32
    %c0_i32_0 = arith.constant 0 : i32
    return %1, %c0_i32 : i32, i32
  }
  func.func @transform_1(%arg0: i32, %arg1: memref<1xi32, #tpu.memory_space<smem>>, %arg2: memref<1xi32, #tpu.memory_space<smem>>) -> (i32, i32) {
    %0 = arith.index_cast %arg0 : i32 to index
    %1 = memref.load %arg1[%0] : memref<1xi32, #tpu.memory_space<smem>>
    %c0_i32 = arith.constant 0 : i32
    %c0_i32_0 = arith.constant 0 : i32
    return %1, %c0_i32 : i32, i32
  }
  func.func @transform_2(%arg0: i32, %arg1: memref<1xi32, #tpu.memory_space<smem>>, %arg2: memref<1xi32, #tpu.memory_space<smem>>) -> (i32, i32) {
    %0 = arith.index_cast %arg0 : i32 to index
    %1 = memref.load %arg2[%0] : memref<1xi32, #tpu.memory_space<smem>>
    %c0_i32 = arith.constant 0 : i32
    %c0_i32_0 = arith.constant 0 : i32
    return %c0_i32, %1 : i32, i32
  }
  func.func @transform_3(%arg0: i32, %arg1: memref<1xi32, #tpu.memory_space<smem>>, %arg2: memref<1xi32, #tpu.memory_space<smem>>) -> (i32, i32) {
    %0 = arith.index_cast %arg0 : i32 to index
    %1 = memref.load %arg2[%0] : memref<1xi32, #tpu.memory_space<smem>>
    %c0_i32 = arith.constant 0 : i32
    %c0_i32_0 = arith.constant 0 : i32
    return %c0_i32, %1 : i32, i32
  }
  func.func @transform_4(%arg0: i32, %arg1: memref<1xi32, #tpu.memory_space<smem>>, %arg2: memref<1xi32, #tpu.memory_space<smem>>) -> (i32, i32) {
    %0 = arith.index_cast %arg0 : i32 to index
    %1 = memref.load %arg2[%0] : memref<1xi32, #tpu.memory_space<smem>>
    %c0_i32 = arith.constant 0 : i32
    %c0_i32_0 = arith.constant 0 : i32
    return %c0_i32, %1 : i32, i32
  }
  func.func @transform_5(%arg0: i32, %arg1: memref<1xi32, #tpu.memory_space<smem>>, %arg2: memref<1xi32, #tpu.memory_space<smem>>) -> (i32, i32) {
    %0 = arith.index_cast %arg0 : i32 to index
    %1 = memref.load %arg2[%0] : memref<1xi32, #tpu.memory_space<smem>>
    %c0_i32 = arith.constant 0 : i32
    %c0_i32_0 = arith.constant 0 : i32
    return %c0_i32, %1 : i32, i32
  }
  func.func @transform_6(%arg0: i32, %arg1: memref<1xi32, #tpu.memory_space<smem>>, %arg2: memref<1xi32, #tpu.memory_space<smem>>) -> (i32, i32) {
    %0 = arith.index_cast %arg0 : i32 to index
    %1 = memref.load %arg1[%0] : memref<1xi32, #tpu.memory_space<smem>>
    %c0_i32 = arith.constant 0 : i32
    %c0_i32_0 = arith.constant 0 : i32
    return %1, %c0_i32 : i32, i32
  }
  func.func @transform_7(%arg0: i32, %arg1: memref<1xi32, #tpu.memory_space<smem>>, %arg2: memref<1xi32, #tpu.memory_space<smem>>) -> (i32, i32) {
    %0 = arith.index_cast %arg0 : i32 to index
    %1 = memref.load %arg1[%0] : memref<1xi32, #tpu.memory_space<smem>>
    %c0_i32 = arith.constant 0 : i32
    %c0_i32_0 = arith.constant 0 : i32
    return %1, %c0_i32 : i32, i32
  }
  func.func @transform_8(%arg0: i32, %arg1: memref<1xi32, #tpu.memory_space<smem>>, %arg2: memref<1xi32, #tpu.memory_space<smem>>) -> (i32, i32, i32) {
    %c0_i32 = arith.constant 0 : i32
    %c0_i32_0 = arith.constant 0 : i32
    %c0_i32_1 = arith.constant 0 : i32
    return %arg0, %c0_i32, %c0_i32_0 : i32, i32, i32
  }
  func.func @transform_9(%arg0: i32, %arg1: memref<1xi32, #tpu.memory_space<smem>>, %arg2: memref<1xi32, #tpu.memory_space<smem>>) -> (i32, i32, i32) {
    %c0_i32 = arith.constant 0 : i32
    %c0_i32_0 = arith.constant 0 : i32
    %c0_i32_1 = arith.constant 0 : i32
    return %arg0, %c0_i32, %c0_i32_0 : i32, i32, i32
  }
}

</mosaic_0001>

<bundles_post_ra>
// kernel: tpu_custom_call.1
= control target key start
LH: loop header
LB: loop body
LE: loop exit
PB: predicated region body
PF: predicated region fallthrough
CT: control target
= control target key end

     0   :  { %v1404_v0 = vmov 0   ;;  %vm466_vm0 = vcmask 1041408   ;;  %vm417_vm1 = vcmask 80896   ;;  %vm1405_vm2 = vmmov 1   ;;  %s1891_s0 = inlined_call_operand.<no memory space> [shape: s32[1], index: 0, kind: input, shape index: {}]   ;;  %s1892_s1 = inlined_call_operand.<no memory space> [shape: s32[1], index: 1, kind: input, shape index: {}]   ;;  %s1893_s4 = inlined_call_operand.vmem [shape: f32[32,128], index: 4, kind: input, shape index: {}]   ;;  %s1894_s8 = inlined_call_operand.vmem [shape: f32[128,1], index: 8, kind: input, shape index: {}]   ;;  %s1895_s5 = inlined_call_operand.vmem [shape: f32[10,128], index: 5, kind: input, shape index: {}]   ;;  %s1896_s3 = inlined_call_operand.vmem [shape: f32[128,10], index: 3, kind: input, shape index: {}]   ;;  %s1897_s2 = inlined_call_operand.vmem [shape: f32[128,32], index: 2, kind: input, shape index: {}]   ;;  %s1898_s9 = inlined_call_operand.vmem [shape: f32[128,1], index: 9, kind: input, shape index: {}]   ;;  %s1899_s7 = inlined_call_operand.vmem [shape: f32[1,128], index: 7, kind: input, shape index: {}]   ;;  %s1900_s6 = inlined_call_operand.vmem [shape: f32[1,128], index: 6, kind: input, shape index: {}]   ;;  %s1901_s10 = inlined_call_operand.vmem [shape: f32[1,3,128], index: 10, kind: output, shape index: {0}]   ;;  %s1902_s11 = inlined_call_operand.vmem [shape: f32[1,128,2], index: 11, kind: output, shape index: {1}]  }
   0x1   :  { %1339 = vset.pattern.permute.xlu1 %v1404_v0  ;;  %s1179_s19 = sshll.u32 %s1891_s0, 4  ;;  %p148_p0 = scmp.lt.s32.totalorder %s1892_s1, 0  ;;  %1338 = vset.pattern.permute.xlu0 %v1404_v0  ;;  %vm1493_vm3 = vmpackc.low %vm466_vm0, %vm1405_vm2  ;;  %vm205_vm4 = vcmask 261120   ;;  %vm1063_vm5 = vcmask 7168   ;;  %vm1112_vm6 = vcmask 15368  }
   0x2   :  { %p133_p1 = scmp.lt.s32.totalorder %s1179_s19, 15 }
   0x3   :  { %s1906_s1 = smov (!%p148_p0, %s1892_s1), 0 }
   0x4   :  { %s1908_s19 = smov (!%p133_p1, %s1179_s19), 15  ;;  %s1183_s24 = sshll.u32 %s1906_s1, 3 }
   0x5   :  { %s1478_s25 = sshll.u32 %s1908_s19, 3  ;;  %s151_s0 = scalar_lea.vmem %s1893_s4, %s1183_s24 }
   0x6   :  { %s1487_s30 = scalar_lea.vmem %s1894_s8, %s1478_s25  ;;  %v201_v1 = vld [vmem:[%s151_s0] sm:$0xff]  ;;  %v202_v2 = vld [vmem:[%s151_s0 + $0x8] sm:$0xff]  ;;  %s157_s14 = scalar_lea.vmem %s1895_s5, %s1183_s24  ;;  %v203_v6 = vld [vmem:[%s151_s0 + $0x10] sm:$0xff] }
   0x7   :  { %v617_v3 = vld [vmem:[%s1487_s30 + $0x10] sm:$0xff]  ;;  %v1322_v4 = vpack.c.bf16 %v202_v2, %v201_v1  ;;  %s1501_s15 = scalar_lea.vmem %s1896_s3, %s1478_s25  ;;  %v415_v7 = vld [vmem:[%s157_s14] sm:$0xff]  ;;  %v416_v8 = vld [vmem:[%s157_s14 + $0x8] sm:$0x3]  ;;  %s1508_s17 = scalar_lea.vmem %s1897_s2, %s1478_s25 }
   0x8   :  { %643 = vperm.xlu1 %1339, %v617_v3   ;;  %v399_v9 = vld [vmem:[%s1501_s15] sm:$0xff]  ;;  %v1330_v10 = vpack.c.bf16 %v416_v8, %v415_v7  ;;  %v618_v11 = vld [vmem:[%s1487_s30 + $0x18] sm:$0xff]  ;;  %v616_v16 = vld [vmem:[%s1487_s30 + $0x8] sm:$0xff]  ;;  %s1578_s18 = scalar_lea.vmem %s1898_s9, %s1478_s25  ;;  %s167_s20 = scalar_lea.vmem %s1899_s7, %s1906_s1 }
   0x9   :  { %1323 = vmatprep.subr.bf16.mxu0 %v1322_v4  ;;  %1298 = vmatprep.mubr.msk.f32.mxu1 %vm417_vm1, %v399_v9  ;;  %v204_v12 = vld [vmem:[%s151_s0 + $0x18] sm:$0xff]  ;;  %v615_v13 = vld [vmem:[%s1487_s30] sm:$0xff]  ;;  %v400_v17 = vld [vmem:[%s1501_s15 + $0x8] sm:$0xff]  ;;  %s162_s23 = scalar_lea.vmem %s1900_s6, %s1906_s1 }
   0xa   :  { %1325 = vmatpush3.bf16.msra.mxu0 %v1322_v4  ;;  %v1326_v14 = vpack.c.bf16 %v204_v12, %v203_v6  ;;  %633 = vperm.xlu0 %1338, %v615_v13   ;;  %v185_v15 = vld [vmem:[%s1508_s17] sm:$0xff]  ;;  %v620_v18 = vld [vmem:[%s1487_s30 + $0x28] sm:$0xff]  ;;  %v401_v19 = vld [vmem:[%s1501_s15 + $0x10] sm:$0xff] }
   0xb   :  { %1332 = vmatprep.subr.msk.bf16.mxu1 %vm1493_vm3, %v1330_v10  ;;  %1270 = vmatprep.mubr.msk.f32.mxu0 %vm205_vm4, %v185_v15  ;;  %v186_v20 = vld [vmem:[%s1508_s17 + $0x8] sm:$0xff]  ;;  %v187_v21 = vld [vmem:[%s1508_s17 + $0x10] sm:$0xff]  ;;  %v619_v22 = vld [vmem:[%s1487_s30 + $0x20] sm:$0xff] }
   0xc   :  { %1335 = vmatpush3.bf16.msk.msra.mxu1 %vm1493_vm3, %v1330_v10  ;;  %648 = vperm.xlu1 %1339, %v618_v11   ;;  %v402_v23 = vld [vmem:[%s1501_s15 + $0x18] sm:$0xff]  ;;  %v403_v25 = vld [vmem:[%s1501_s15 + $0x20] sm:$0xff]  ;;  %v621_v28 = vld [vmem:[%s1487_s30 + $0x30] sm:$0xff] }
   0xd   :  { %1327 = vmatprep.subr.bf16.mxu0 %v1326_v14  ;;  %v622_v24 = vld [vmem:[%s1487_s30 + $0x38] sm:$0xff]  ;;  %v189_v27 = vld [vmem:[%s1508_s17 + $0x20] sm:$0xff]  ;;  %v404_v29 = vld [vmem:[%s1501_s15 + $0x28] sm:$0xff] }
   0xe   :  { %1329 = vmatpush3.bf16.msra.mxu0 %v1326_v14  ;;  %638 = vperm.xlu0 %1338, %v616_v16   ;;  %v188_v26 = vld [vmem:[%s1508_s17 + $0x18] sm:$0xff]  ;;  %v624_v30 = vld [vmem:[%s1487_s30 + $0x48] sm:$0xff]  ;;  %v405_v31 = vld [vmem:[%s1501_s15 + $0x30] sm:$0xff] }
   0xf   :  { %1299 = vmatmul.mubr.msk.f32.vlgmr.msra.gmra.mrb[0].mxu1 %vm417_vm1, %v400_v17  ;;  %v190_v32 = vld [vmem:[%s1508_s17 + $0x28] sm:$0xff]  ;;  %v191_v33 = vld [vmem:[%s1508_s17 + $0x30] sm:$0xff]  ;;  %v623_v34 = vld [vmem:[%s1487_s30 + $0x40] sm:$0xff] }
  0x10   :  { %658 = vperm.xlu1 %1339, %v620_v18   ;;  %1301 = vmatprep.mubr.msk.f32.mxu1 %vm417_vm1, %v401_v19  ;;  %v406_v35 = vld [vmem:[%s1501_s15 + $0x38] sm:$0xff]  ;;  %v407_v37 = vld [vmem:[%s1501_s15 + $0x40] sm:$0xff]  ;;  %v625_v40 = vld [vmem:[%s1487_s30 + $0x50] sm:$0xff] }
  0x11   :  { %1271 = vmatmul.mubr.msk.f32.vlgmr.msra.gmra.mrb[0].mxu0 %vm205_vm4, %v186_v20  ;;  %v626_v36 = vld [vmem:[%s1487_s30 + $0x58] sm:$0xff]  ;;  %v193_v39 = vld [vmem:[%s1508_s17 + $0x40] sm:$0xff]  ;;  %v408_v41 = vld [vmem:[%s1501_s15 + $0x48] sm:$0xff] }
  0x12   :  { %1273 = vmatprep.mubr.msk.f32.mxu0 %vm205_vm4, %v187_v21  ;;  %653 = vperm.xlu0 %1338, %v619_v22   ;;  %v192_v38 = vld [vmem:[%s1508_s17 + $0x38] sm:$0xff]  ;;  %v628_v42 = vld [vmem:[%s1487_s30 + $0x68] sm:$0xff]  ;;  %v409_v43 = vld [vmem:[%s1501_s15 + $0x50] sm:$0xff] }
  0x13   :  { %1302 = vmatmul.mubr.msk.f32.gmra.mrb[2].mxu1 %vm417_vm1, %v402_v23  ;;  %v194_v44 = vld [vmem:[%s1508_s17 + $0x48] sm:$0xff]  ;;  %v195_v45 = vld [vmem:[%s1508_s17 + $0x50] sm:$0xff]  ;;  %v627_v46 = vld [vmem:[%s1487_s30 + $0x60] sm:$0xff] }
  0x14   :  { %668 = vperm.xlu1 %1339, %v622_v24   ;;  %1304 = vmatprep.mubr.msk.f32.mxu1 %vm417_vm1, %v403_v25  ;;  %v410_v47 = vld [vmem:[%s1501_s15 + $0x58] sm:$0xff]  ;;  %v411_v49 = vld [vmem:[%s1501_s15 + $0x60] sm:$0xff]  ;;  %v629_v52 = vld [vmem:[%s1487_s30 + $0x70] sm:$0xff] }
  0x15   :  { %1274 = vmatmul.mubr.msk.f32.gmra.mrb[2].mxu0 %vm205_vm4, %v188_v26  ;;  %v630_v48 = vld [vmem:[%s1487_s30 + $0x78] sm:$0xff]  ;;  %v197_v51 = vld [vmem:[%s1508_s17 + $0x60] sm:$0xff]  ;;  %v412_v53 = vld [vmem:[%s1501_s15 + $0x68] sm:$0xff] }
  0x16   :  { %1276 = vmatprep.mubr.msk.f32.mxu0 %vm205_vm4, %v189_v27  ;;  %663 = vperm.xlu0 %1338, %v621_v28   ;;  %v196_v50 = vld [vmem:[%s1508_s17 + $0x58] sm:$0xff]  ;;  %v783_v54 = vld [vmem:[%s1578_s18 + $0x8] sm:$0xff]  ;;  %v413_v55 = vld [vmem:[%s1501_s15 + $0x70] sm:$0xff] }
  0x17   :  { %1305 = vmatmul.mubr.msk.f32.gmra.mrb[4].mxu1 %vm417_vm1, %v404_v29  ;;  %v198_v56 = vld [vmem:[%s1508_s17 + $0x68] sm:$0xff]  ;;  %v199_v57 = vld [vmem:[%s1508_s17 + $0x70] sm:$0xff]  ;;  %v782_v58 = vld [vmem:[%s1578_s18] sm:$0xff] }
  0x18   :  { %678 = vperm.xlu1 %1339, %v624_v30   ;;  %1307 = vmatprep.mubr.msk.f32.mxu1 %vm417_vm1, %v405_v31  ;;  %v414_v59 = vld [vmem:[%s1501_s15 + $0x78] sm:$0xff]  ;;  %v784_v62 = vld [vmem:[%s1578_s18 + $0x10] sm:$0xff]  ;;  %v787_v63 = vld [vmem:[%s1578_s18 + $0x28] sm:$0xff] }
  0x19   :  { %1277 = vmatmul.mubr.msk.f32.gmra.mrb[4].mxu0 %vm205_vm4, %v190_v32  ;;  %v785_v60 = vld [vmem:[%s1578_s18 + $0x18] sm:$0xff]  ;;  %v786_v0 = vld [vmem:[%s1578_s18 + $0x20] sm:$0xff]  ;;  %v788_v2 = vld [vmem:[%s1578_s18 + $0x30] sm:$0xff] }
  0x1a   :  { %1279 = vmatprep.mubr.msk.f32.mxu0 %vm205_vm4, %v191_v33  ;;  %673 = vperm.xlu0 %1338, %v623_v34   ;;  %v200_v61 = vld [vmem:[%s1508_s17 + $0x78] sm:$0xff]  ;;  %v791_v3 = vld [vmem:[%s1578_s18 + $0x48] sm:$0xff]  ;;  %v790_v4 = vld [vmem:[%s1578_s18 + $0x40] sm:$0xff] }
  0x1b   :  { %1308 = vmatmul.mubr.msk.f32.gmra.mrb[6].mxu1 %vm417_vm1, %v406_v35  ;;  %v789_v1 = vld [vmem:[%s1578_s18 + $0x38] sm:$0xff]  ;;  %v792_v6 = vld [vmem:[%s1578_s18 + $0x50] sm:$0xff]  ;;  %v795_v7 = vld [vmem:[%s1578_s18 + $0x68] sm:$0xff] }
  0x1c   :  { %688 = vperm.xlu1 %1339, %v626_v36   ;;  %1310 = vmatprep.mubr.msk.f32.mxu1 %vm417_vm1, %v407_v37  ;;  %v793_v5 = vld [vmem:[%s1578_s18 + $0x58] sm:$0xff]  ;;  %v794_v8 = vld [vmem:[%s1578_s18 + $0x60] sm:$0xff]  ;;  %v796_v10 = vld [vmem:[%s1578_s18 + $0x70] sm:$0xff] }
  0x1d   :  { %1280 = vmatmul.mubr.msk.f32.gmra.mrb[6].mxu0 %vm205_vm4, %v192_v38  ;;  %v797_v9 = vld [vmem:[%s1578_s18 + $0x78] sm:$0xff]  ;;  %v1648_v31 = vld [vmem:[%s167_s20] ss:$0 sm:$0xff] }
  0x1e   :  { %1282 = vmatprep.mubr.msk.f32.mxu0 %vm205_vm4, %v193_v39  ;;  %683 = vperm.xlu0 %1338, %v625_v40   ;;  %v1650_v35 = vld [vmem:[%s162_s23] ss:$0 sm:$0xff] }
  0x1f   :  { %1311 = vmatmul.mubr.msk.f32.gmra.mrb[8].mxu1 %vm417_vm1, %v408_v41 }
  0x20   :  { %698 = vperm.xlu1 %1339, %v628_v42   ;;  %1313 = vmatprep.mubr.msk.f32.mxu1 %vm417_vm1, %v409_v43 }
  0x21   :  { %1283 = vmatmul.mubr.msk.f32.gmra.mrb[8].mxu0 %vm205_vm4, %v194_v44 }
  0x22   :  { %1285 = vmatprep.mubr.msk.f32.mxu0 %vm205_vm4, %v195_v45  ;;  %693 = vperm.xlu0 %1338, %v627_v46  }
  0x23   :  { %1314 = vmatmul.mubr.msk.f32.gmra.mrb[10].mxu1 %vm417_vm1, %v410_v47 }
  0x24   :  { %708 = vperm.xlu1 %1339, %v630_v48   ;;  %1316 = vmatprep.mubr.msk.f32.mxu1 %vm417_vm1, %v411_v49 }
  0x25   :  { %1286 = vmatmul.mubr.msk.f32.gmra.mrb[10].mxu0 %vm205_vm4, %v196_v50 }
  0x26   :  { %1288 = vmatprep.mubr.msk.f32.mxu0 %vm205_vm4, %v197_v51  ;;  %703 = vperm.xlu0 %1338, %v629_v52  }
  0x27   :  { %1317 = vmatmul.mubr.msk.f32.gmra.mrb[12].mxu1 %vm417_vm1, %v412_v53 }
  0x28   :  { %805 = vperm.xlu1 %1339, %v783_v54   ;;  %1319 = vmatprep.mubr.msk.f32.mxu1 %vm417_vm1, %v413_v55 }
  0x29   :  { %1289 = vmatmul.mubr.msk.f32.gmra.mrb[12].mxu0 %vm205_vm4, %v198_v56 }
  0x2a   :  { %1291 = vmatprep.mubr.msk.f32.mxu0 %vm205_vm4, %v199_v57  ;;  %800 = vperm.xlu0 %1338, %v782_v58  }
  0x2b   :  { %1320 = vmatmul.mubr.msk.f32.gmra.mrb[14].mxu1 %vm417_vm1, %v414_v59 }
  0x2c   :  { %815 = vperm.xlu1 %1339, %v785_v60  }
  0x2d   :  { %1292 = vmatmul.mubr.msk.f32.gmra.mrb[14].mxu0 %vm205_vm4, %v200_v61 }
  0x2e   :  { %810 = vperm.xlu0 %1338, %v784_v62  }
  0x30   :  { %825 = vperm.xlu1 %1339, %v787_v63  }
  0x32   :  { %820 = vperm.xlu0 %1338, %v786_v0  }
  0x34   :  { %835 = vperm.xlu1 %1339, %v789_v1  }
  0x36   :  { %830 = vperm.xlu0 %1338, %v788_v2  }
  0x38   :  { %845 = vperm.xlu1 %1339, %v791_v3  }
  0x3a   :  { %840 = vperm.xlu0 %1338, %v790_v4  }
  0x3c   :  { %855 = vperm.xlu1 %1339, %v793_v5  }
  0x3e   :  { %850 = vperm.xlu0 %1338, %v792_v6  }
  0x40   :  { %865 = vperm.xlu1 %1339, %v795_v7  }
  0x42   :  { %860 = vperm.xlu0 %1338, %v794_v8  }
  0x44   :  { %875 = vperm.xlu1 %1339, %v797_v9  }
  0x46   :  { %870 = vperm.xlu0 %1338, %v796_v10  }
  0x87   :  { %v1614_v11 = vpop.permute.xlu1 %643 }
  0x89   :  { %v634_v12 = vpop.permute.xlu0 %633 }
  0x8b   :  { %v649_v13 = vpop.permute.xlu1 %648 }
  0x8d   :  { %v639_v14 = vpop.permute.xlu0 %638 }
  0x8f   :  { %v1616_v15 = vpop.permute.xlu1 %658 }
  0x91   :  { %v1618_v16 = vpop.permute.xlu0 %653 }
  0x93   :  { %v1620_v17 = vpop.permute.xlu1 %668 }
  0x95   :  { %v1622_v18 = vpop.permute.xlu0 %663 }
  0x97   :  { %v1624_v19 = vpop.permute.xlu1 %678 }
  0x99   :  { %v1626_v20 = vpop.permute.xlu0 %673 }
  0x9b   :  { %v1628_v21 = vpop.permute.xlu1 %688 }
  0x9d   :  { %v1630_v22 = vpop.permute.xlu0 %683 }
  0x9f   :  { %v1632_v23 = vpop.permute.xlu1 %698 }
  0xa1   :  { %v1634_v24 = vpop.permute.xlu0 %693 }
  0xa3   :  { %v1636_v25 = vpop.permute.xlu1 %708 }
  0xa5   :  { %v1638_v26 = vpop.permute.xlu0 %703 }
  0xa7   :  { %v806_v27 = vpop.permute.xlu1 %805 }
  0xa9   :  { %v801_v28 = vpop.permute.xlu0 %800 }
  0xab   :  { %v816_v29 = vpop.permute.xlu1 %815 }
  0xad   :  { %v811_v30 = vpop.permute.xlu0 %810 }
  0xaf   :  { %v826_v38 = vpop.permute.xlu1 %825 }
  0xb1   :  { %v821_v45 = vpop.permute.xlu0 %820 }
  0xb3   :  { %v836_v62 = vpop.permute.xlu1 %835 }
  0xb5   :  { %v831_v7 = vpop.permute.xlu0 %830 }
  0xe2   :  { %v1300_v32 = vpop.f32.mrb[0].mxu1 }
  0xe3   :  { %v879_v33 = vsub.f32 %v1300_v32, %v806_v27  ;;  %v536_v34 = vpop.f32.mrb[1].mxu1 }
  0xe4   :  { %v878_v36 = vsub.f32 %v536_v34, %v801_v28  ;;  %v1272_v37 = vpop.f32.mrb[0].mxu0 }
  0xe5   :  { %v902_v39 = vsub.f32 %v879_v33, %v1648_v31  ;;  %v712_v40 = vsub.f32 %v1272_v37, %v639_v14  ;;  %v320_v41 = vpop.f32.mrb[1].mxu0  ;;  %v846_v37 = vpop.permute.xlu1 %845 }
  0xe6   :  { %v901_v42 = vsub.f32 %v878_v36, %v1648_v31  ;;  %v1303_v43 = vpop.f32.mrb[2].mxu1  ;;  %v711_v44 = vsub.f32 %v320_v41, %v634_v12 }
  0xe7   :  { %v919_v46 = vmul.f32 1.442695, %v902_v39  ;;  %v735_v47 = vsub.f32 %v712_v40, %v1650_v35  ;;  %v881_v48 = vsub.f32 %v1303_v43, %v816_v29  ;;  %v546_v49 = vpop.f32.mrb[3].mxu1 }
  0xe8   :  { %v917_v50 = vmul.f32 1.442695, %v901_v42  ;;  %v734_v51 = vsub.f32 %v711_v44, %v1650_v35  ;;  %v880_v52 = vsub.f32 %v546_v49, %v811_v30  ;;  %v1275_v53 = vpop.f32.mrb[2].mxu0 }
  0xe9   :  { %1340 = vpow2.f32 %v919_v46  ;;  %v752_v54 = vmul.f32 1.442695, %v735_v47  ;;  %v904_v55 = vsub.f32 %v881_v48, %v1648_v31  ;;  %v714_v56 = vsub.f32 %v1275_v53, %v649_v13  ;;  %v330_v57 = vpop.f32.mrb[3].mxu0  ;;  %v841_v46 = vpop.permute.xlu0 %840 }
  0xea   :  { %1342 = vpow2.f32 %v917_v50  ;;  %v750_v58 = vmul.f32 1.442695, %v734_v51  ;;  %v903_v59 = vsub.f32 %v880_v52, %v1648_v31  ;;  %v1306_v60 = vpop.f32.mrb[4].mxu1  ;;  %v713_v61 = vsub.f32 %v330_v57, %v1614_v11 }
  0xeb   :  { %1344 = vpow2.f32 %v752_v54  ;;  %v923_v63 = vmul.f32 1.442695, %v904_v55  ;;  %v737_v0 = vsub.f32 %v714_v56, %v1650_v35  ;;  %v883_v1 = vsub.f32 %v1306_v60, %v826_v38  ;;  %v556_v2 = vpop.f32.mrb[5].mxu1 }
  0xec   :  { %1346 = vpow2.f32 %v750_v58  ;;  %v921_v3 = vmul.f32 1.442695, %v903_v59  ;;  %v736_v4 = vsub.f32 %v713_v61, %v1650_v35  ;;  %v882_v5 = vsub.f32 %v556_v2, %v821_v45  ;;  %v1278_v6 = vpop.f32.mrb[4].mxu0 }
  0xed   :  { %1348 = vpow2.f32 %v923_v63  ;;  %v756_v8 = vmul.f32 1.442695, %v737_v0  ;;  %v906_v9 = vsub.f32 %v883_v1, %v1648_v31  ;;  %v716_v10 = vsub.f32 %v1278_v6, %v1616_v15  ;;  %v340_v11 = vpop.f32.mrb[5].mxu0  ;;  %v856_v1 = vpop.permute.xlu1 %855 }
  0xee   :  { %1350 = vpow2.f32 %v921_v3  ;;  %v754_v12 = vmul.f32 1.442695, %v736_v4  ;;  %v905_v13 = vsub.f32 %v882_v5, %v1648_v31  ;;  %v1309_v14 = vpop.f32.mrb[6].mxu1  ;;  %v715_v27 = vsub.f32 %v340_v11, %v1618_v16 }
  0xef   :  { %1352 = vpow2.f32 %v756_v8  ;;  %v927_v28 = vmul.f32 1.442695, %v906_v9  ;;  %v739_v29 = vsub.f32 %v716_v10, %v1650_v35  ;;  %v885_v30 = vsub.f32 %v1309_v14, %v836_v62  ;;  %v566_v32 = vpop.f32.mrb[7].mxu1 }
  0xf0   :  { %1354 = vpow2.f32 %v754_v12  ;;  %v925_v33 = vmul.f32 1.442695, %v905_v13  ;;  %v738_v34 = vsub.f32 %v715_v27, %v1650_v35  ;;  %v884_v36 = vsub.f32 %v566_v32, %v831_v7  ;;  %v1281_v15 = vpop.f32.mrb[6].mxu0 }
  0xf1   :  { %1356 = vpow2.f32 %v927_v28  ;;  %v760_v38 = vmul.f32 1.442695, %v739_v29  ;;  %v908_v39 = vsub.f32 %v885_v30, %v1648_v31  ;;  %v718_v40 = vsub.f32 %v1281_v15, %v1620_v17  ;;  %v350_v16 = vpop.f32.mrb[7].mxu0 }
  0xf2   :  { %1358 = vpow2.f32 %v925_v33  ;;  %v758_v41 = vmul.f32 1.442695, %v738_v34  ;;  %v907_v42 = vsub.f32 %v884_v36, %v1648_v31  ;;  %v1312_v43 = vpop.f32.mrb[8].mxu1  ;;  %v717_v44 = vsub.f32 %v350_v16, %v1622_v18  ;;  %v851_v34 = vpop.permute.xlu0 %850 }
  0xf3   :  { %v1341_v45 = vpop.eup %1340  ;;  %1360 = vpow2.f32 %v760_v38  ;;  %v931_v47 = vmul.f32 1.442695, %v908_v39  ;;  %v741_v48 = vsub.f32 %v718_v40, %v1650_v35  ;;  %v887_v49 = vsub.f32 %v1312_v43, %v846_v37  ;;  %v576_v50 = vpop.f32.mrb[9].mxu1 }
  0xf4   :  { %v1343_v51 = vpop.eup %1342  ;;  %1362 = vpow2.f32 %v758_v41  ;;  %v929_v52 = vmul.f32 1.442695, %v907_v42  ;;  %v740_v17 = vsub.f32 %v717_v44, %v1650_v35  ;;  %v886_v53 = vsub.f32 %v576_v50, %v841_v46  ;;  %1082 = vadd.xlane.f32.xlu0 %v1341_v45  ;;  %v1284_v54 = vpop.f32.mrb[8].mxu0 }
  0xf5   :  { %v1345_v55 = vpop.eup %1344  ;;  %v987_v56 = vadd.f32 %v1343_v51, %v1341_v45  ;;  %1364 = vpow2.f32 %v931_v47  ;;  %v764_v18 = vmul.f32 1.442695, %v741_v48  ;;  %v910_v57 = vsub.f32 %v887_v49, %v1648_v31  ;;  %1080 = vadd.xlane.f32.xlu1 %v1343_v51  ;;  %v360_v58 = vpop.f32.mrb[9].mxu0 }
  0xf6   :  { %v1347_v59 = vpop.eup %1346  ;;  %v950_v60 = vmul.f32 %v1345_v55, %v1341_v45  ;;  %1366 = vpow2.f32 %v929_v52  ;;  %v762_v61 = vmul.f32 1.442695, %v740_v17  ;;  %v909_v62 = vsub.f32 %v886_v53, %v1648_v31  ;;  %v1315_v63 = vpop.f32.mrb[10].mxu1 }
  0xf7   :  { %v1349_v0 = vpop.eup %1348  ;;  %v949_v2 = vmul.f32 %v1347_v59, %v1343_v51  ;;  %v965_v3 = vadd.f32 %v1347_v59, %v1345_v55  ;;  %1368 = vpow2.f32 %v764_v18  ;;  %v935_v4 = vmul.f32 1.442695, %v910_v57  ;;  %v586_v5 = vpop.f32.mrb[11].mxu1 }
  0xf8   :  { %v1351_v6 = vpop.eup %1350  ;;  %1370 = vpow2.f32 %v762_v61  ;;  %v933_v7 = vmul.f32 1.442695, %v909_v62  ;;  %v720_v8 = vsub.f32 %v1284_v54, %v1624_v19  ;;  %v889_v9 = vsub.f32 %v1315_v63, %v856_v1  ;;  %1086 = vadd.xlane.f32.xlu0 %v1349_v0  ;;  %v1287_v10 = vpop.f32.mrb[10].mxu0 }
  0xf9   :  { %v1353_v11 = vpop.eup %1352  ;;  %v1009_v12 = vadd.f32 %v950_v60, %v949_v2  ;;  %v988_v13 = vadd.f32 %v1351_v6, %v987_v56  ;;  %1372 = vpow2.f32 %v935_v4  ;;  %v719_v14 = vsub.f32 %v360_v58, %v1626_v20  ;;  %1033 = vadd.xlane.f32.xlu1 %v1345_v55  ;;  %v1677_v27 = vpop.f32.mrb[11].mxu0 }
  0xfa   :  { %v1679_v28 = vpop.eup %1354  ;;  %v952_v29 = vmul.f32 %v1353_v11, %v1349_v0  ;;  %1374 = vpow2.f32 %v933_v7  ;;  %v743_v30 = vsub.f32 %v720_v8, %v1650_v35  ;;  %v912_v19 = vsub.f32 %v889_v9, %v1648_v31  ;;  %v1318_v32 = vpop.f32.mrb[12].mxu1 }
  0xfb   :  { %v1683_v33 = vpop.eup %1356  ;;  %v951_v36 = vmul.f32 %v1679_v28, %v1351_v6  ;;  %v966_v15 = vadd.f32 %v1679_v28, %v965_v3  ;;  %v989_v20 = vadd.f32 %v1349_v0, %v988_v13  ;;  %v742_v37 = vsub.f32 %v719_v14, %v1650_v35  ;;  %v1688_v38 = vpop.f32.mrb[13].mxu1 }
  0xfc   :  { %v1359_v39 = vpop.eup %1358  ;;  %v768_v40 = vmul.f32 1.442695, %v743_v30  ;;  %v939_v16 = vmul.f32 1.442695, %v912_v19  ;;  %v888_v41 = vsub.f32 %v586_v5, %v851_v34  ;;  %v722_v42 = vsub.f32 %v1287_v10, %v1628_v21  ;;  %1031 = vadd.xlane.f32.xlu0 %v1347_v59  ;;  %v1691_v43 = vpop.f32.mrb[12].mxu0 }
  0xfd   :  { %v1693_v44 = vpop.eup %1360  ;;  %v1010_v45 = vadd.f32 %v1009_v12, %v951_v36  ;;  %v990_v46 = vadd.f32 %v1359_v39, %v989_v20  ;;  %v967_v47 = vadd.f32 %v1353_v11, %v966_v15  ;;  %v766_v48 = vmul.f32 1.442695, %v742_v37  ;;  %1084 = vadd.xlane.f32.xlu1 %v1351_v6  ;;  %v1695_v49 = vpop.f32.mrb[13].mxu0 }
  0xfe   :  { %v1363_v50 = vpop.eup %1362  ;;  %v954_v51 = vmul.f32 %v1693_v44, %v1683_v33  ;;  %1376 = vpow2.f32 %v768_v40  ;;  %v911_v52 = vsub.f32 %v888_v41, %v1648_v31  ;;  %v745_v21 = vsub.f32 %v722_v42, %v1650_v35  ;;  %v1321_v17 = vpop.f32.mrb[14].mxu1 }
  0xff   :  { %v1701_v53 = vpop.eup %1364  ;;  %v866_v54 = vpop.permute.xlu1 %865  ;;  %v953_v55 = vmul.f32 %v1363_v50, %v1359_v39  ;;  %v968_v56 = vadd.f32 %v1363_v50, %v967_v47  ;;  %v1011_v18 = vadd.f32 %v1010_v45, %v952_v29  ;;  %v991_v57 = vadd.f32 %v1683_v33, %v990_v46 }
 0x100   :  { %v606_v58 = vpop.f32.mrb[15].mxu1  ;;  %v1367_v59 = vpop.eup %1366  ;;  %1378 = vpow2.f32 %v939_v16  ;;  %v937_v60 = vmul.f32 1.442695, %v911_v52  ;;  %v772_v61 = vmul.f32 1.442695, %v745_v21  ;;  %v891_v62 = vsub.f32 %v1318_v32, %v866_v54  ;;  %1037 = vadd.xlane.f32.xlu0 %v1353_v11 }
 0x101   :  { %v1293_v63 = vpop.f32.mrb[14].mxu0  ;;  %v1704_v0 = vpop.eup %1368  ;;  %v1012_v2 = vadd.f32 %v1011_v18, %v953_v55  ;;  %v992_v3 = vadd.f32 %v1367_v59, %v991_v57  ;;  %v969_v4 = vadd.f32 %v1693_v44, %v968_v56  ;;  %1380 = vpow2.f32 %v766_v48  ;;  %1088 = vadd.xlane.f32.xlu1 %v1359_v39 }
 0x102   :  { %v861_v1 = vpop.permute.xlu0 %860  ;;  %v390_v5 = vpop.f32.mrb[15].mxu0  ;;  %v956_v7 = vmul.f32 %v1704_v0, %v1701_v53  ;;  %1382 = vpow2.f32 %v937_v60  ;;  %v914_v8 = vsub.f32 %v891_v62, %v1648_v31  ;;  %v721_v9 = vsub.f32 %v1677_v27, %v1630_v22 }
 0x103   :  { %v1371_v6 = vpop.eup %1370  ;;  %v1013_v13 = vadd.f32 %v1012_v2, %v954_v51  ;;  %v993_v14 = vadd.f32 %v1701_v53, %v992_v3  ;;  %1384 = vpow2.f32 %v772_v61  ;;  %v890_v32 = vsub.f32 %v1688_v38, %v861_v1  ;;  %v876_v34 = vpop.permute.xlu1 %875 }
 0x104   :  { %v1712_v10 = vpop.eup %1372  ;;  %v955_v11 = vmul.f32 %v1371_v6, %v1367_v59  ;;  %v970_v12 = vadd.f32 %v1371_v6, %v969_v4  ;;  %v943_v30 = vmul.f32 1.442695, %v914_v8  ;;  %v744_v19 = vsub.f32 %v721_v9, %v1650_v35  ;;  %1090 = vadd.xlane.f32.xlu0 %v1683_v33 }
 0x105   :  { %v1715_v29 = vpop.eup %1374  ;;  %v724_v15 = vsub.f32 %v1691_v43, %v1632_v23  ;;  %1039 = vadd.xlane.f32.xlu1 %v1363_v50  ;;  %v913_v37 = vsub.f32 %v890_v32, %v1648_v31  ;;  %v893_v39 = vsub.f32 %v1321_v17, %v876_v34  ;;  %v723_v41 = vsub.f32 %v1695_v49, %v1634_v24 }
 0x106   :  { %v1014_v36 = vadd.f32 %v1013_v13, %v955_v11  ;;  %v994_v22 = vadd.f32 %v1715_v29, %v993_v14  ;;  %v971_v27 = vadd.f32 %v1704_v0, %v970_v12  ;;  %1386 = vpow2.f32 %v943_v30  ;;  %v871_v40 = vpop.permute.xlu0 %870 }
 0x107   :  { %v770_v20 = vmul.f32 1.442695, %v744_v19  ;;  %v747_v33 = vsub.f32 %v724_v15, %v1650_v35  ;;  %v941_v45 = vmul.f32 1.442695, %v913_v37  ;;  %v916_v23 = vsub.f32 %v893_v39, %v1648_v31 }
 0x108   :  { %v1015_v16 = vadd.f32 %v1014_v36, %v956_v7  ;;  %v995_v38 = vadd.f32 %v1712_v10, %v994_v22  ;;  %v1729_v42 = vpop.eup %1376  ;;  %v892_v43 = vsub.f32 %v606_v58, %v871_v40  ;;  %1035 = vadd.xlane.f32.xlu0 %v1679_v28  ;;  %v746_v48 = vsub.f32 %v723_v41, %v1650_v35 }
 0x109   :  { %1388 = vpow2.f32 %v770_v20  ;;  %v958_v46 = vmul.f32 %v1729_v42, %v1712_v10  ;;  %v776_v47 = vmul.f32 1.442695, %v747_v33  ;;  %v726_v50 = vsub.f32 %v1293_v63, %v1636_v25  ;;  %1092 = vadd.xlane.f32.xlu1 %v1367_v59 }
 0x10a   :  { %v1737_v51 = vpop.eup %1378  ;;  %1390 = vpow2.f32 %v941_v45  ;;  %v947_v24 = vmul.f32 1.442695, %v916_v23  ;;  %v915_v49 = vsub.f32 %v892_v43, %v1648_v31  ;;  %v725_v52 = vsub.f32 %v390_v5, %v1638_v26 }
 0x10b   :  { %v1381_v21 = vpop.eup %1380  ;;  %1392 = vpow2.f32 %v776_v47  ;;  %v774_v28 = vmul.f32 1.442695, %v746_v48  ;;  %v749_v17 = vsub.f32 %v726_v50, %v1650_v35 }
 0x10c   :  { %v1383_v54 = vpop.eup %1382  ;;  %v957_v55 = vmul.f32 %v1381_v21, %v1715_v29  ;;  %v972_v56 = vadd.f32 %v1381_v21, %v971_v27  ;;  %1394 = vpow2.f32 %v947_v24  ;;  %v945_v25 = vmul.f32 1.442695, %v915_v49  ;;  %1041 = vadd.xlane.f32.xlu0 %v1693_v44 }
 0x10d   :  { %v996_v18 = vadd.f32 %v1383_v54, %v995_v38  ;;  %1396 = vpow2.f32 %v774_v28  ;;  %v780_v57 = vmul.f32 1.442695, %v749_v17  ;;  %v748_v31 = vsub.f32 %v725_v52, %v1650_v35  ;;  %1043 = vadd.xlane.f32.xlu1 %v1371_v6  ;;  %v1385_v26 = vpop.eup %1384 }
 0x10e   :  { %v1016_v58 = vadd.f32 %v1015_v16, %v957_v55  ;;  %v973_v59 = vadd.f32 %v1729_v42, %v972_v56  ;;  %1398 = vpow2.f32 %v945_v25  ;;  %v960_v60 = vmul.f32 %v1385_v26, %v1737_v51 }
 0x10f   :  { %v997_v61 = vadd.f32 %v1737_v51, %v996_v18  ;;  %1400 = vpow2.f32 %v780_v57  ;;  %v778_v62 = vmul.f32 1.442695, %v748_v31 }
 0x110   :  { %v1387_v63 = vpop.eup %1386  ;;  %v1017_v1 = vadd.f32 %v1016_v58, %v958_v46  ;;  %1094 = vadd.xlane.f32.xlu0 %v1701_v53 }
 0x111   :  { %1402 = vpow2.f32 %v778_v62  ;;  %1096 = vadd.xlane.f32.xlu1 %v1715_v29 }
 0x113   :  { %v1389_v35 = vpop.eup %1388 }
 0x114   :  { %v959_v44 = vmul.f32 %v1389_v35, %v1383_v54  ;;  %v974_v2 = vadd.f32 %v1389_v35, %v973_v59  ;;  %v1391_v3 = vpop.eup %1390  ;;  %1045 = vadd.xlane.f32.xlu0 %v1704_v0 }
 0x115   :  { %v1393_v4 = vpop.eup %1392  ;;  %v998_v6 = vadd.f32 %v1391_v3, %v997_v61  ;;  %1047 = vadd.xlane.f32.xlu1 %v1381_v21 }
 0x116   :  { %v1018_v5 = vadd.f32 %v1017_v1, %v959_v44  ;;  %v975_v7 = vadd.f32 %v1385_v26, %v974_v2  ;;  %v1395_v8 = vpop.eup %1394  ;;  %v962_v9 = vmul.f32 %v1393_v4, %v1387_v63 }
 0x117   :  { %v1397_v11 = vpop.eup %1396  ;;  %v999_v13 = vadd.f32 %v1387_v63, %v998_v6 }
 0x118   :  { %v1019_v12 = vadd.f32 %v1018_v5, %v960_v60  ;;  %v1399_v53 = vpop.eup %1398  ;;  %v961_v14 = vmul.f32 %v1397_v11, %v1391_v3  ;;  %v976_v30 = vadd.f32 %v1397_v11, %v975_v7  ;;  %1098 = vadd.xlane.f32.xlu0 %v1712_v10 }
 0x119   :  { %v1401_v29 = vpop.eup %1400  ;;  %v1000_v19 = vadd.f32 %v1399_v53, %v999_v13  ;;  %1100 = vadd.xlane.f32.xlu1 %v1383_v54 }
 0x11a   :  { %v1020_v32 = vadd.f32 %v1019_v12, %v961_v14  ;;  %v964_v0 = vmul.f32 %v1401_v29, %v1395_v8  ;;  %v977_v34 = vadd.f32 %v1393_v4, %v976_v30 }
 0x11b   :  { %v1403_v36 = vpop.eup %1402  ;;  %v1001_v22 = vadd.f32 %v1395_v8, %v1000_v19 }
 0x11c   :  { %v963_v27 = vmul.f32 %v1403_v36, %v1399_v53  ;;  %v978_v15 = vadd.f32 %v1403_v36, %v977_v34  ;;  %v1021_v20 = vadd.f32 %v1020_v32, %v962_v9  ;;  %1049 = vadd.xlane.f32.xlu0 %v1729_v42 }
 0x11d   :  { %v1002_v37 = vrot.slane %v1001_v22, 4  ;;  %1051 = vadd.xlane.f32.xlu1 %v1389_v35 }
 0x11e   :  { %v979_v39 = vadd.f32 %v1401_v29, %v978_v15  ;;  %v1022_v40 = vadd.f32 %v1021_v20, %v963_v27 }
 0x11f   :  { %v1003_v16 = vadd.f32 %v1002_v37, %v1001_v22 }
 0x120   :  { %v980_v38 = vrot.slane %v979_v39, 4  ;;  %v1023_v10 = vadd.f32 %v1022_v40, %v964_v0  ;;  %1102 = vadd.xlane.f32.xlu0 %v1737_v51 }
 0x121   :  { %v1004_v33 = vrot.slane %v1003_v16, 2  ;;  %1104 = vadd.xlane.f32.xlu1 %v1391_v3 }
 0x122   :  { %v981_v41 = vadd.f32 %v980_v38, %v979_v39  ;;  %v1024_v45 = vrot.slane %v1023_v10, 4 }
 0x123   :  { %v1005_v23 = vadd.f32 %v1004_v33, %v1003_v16 }
 0x124   :  { %v982_v43 = vrot.slane %v981_v41, 2  ;;  %v1025_v46 = vadd.f32 %v1024_v45, %v1023_v10  ;;  %1053 = vadd.xlane.f32.xlu0 %v1385_v26 }
 0x125   :  { %v1006_v47 = vrot.slane %v1005_v23, 1  ;;  %1055 = vadd.xlane.f32.xlu1 %v1397_v11 }
 0x126   :  { %v983_v42 = vadd.f32 %v982_v43, %v981_v41  ;;  %v1026_v48 = vrot.slane %v1025_v46, 2 }
 0x127   :  { %v1007_v50 = vadd.f32 %v1006_v47, %v1005_v23 }
 0x128   :  { %v984_v24 = vrot.slane %v983_v42, 1  ;;  %v1027_v49 = vadd.f32 %v1026_v48, %v1025_v46  ;;  %1106 = vadd.xlane.f32.xlu0 %v1387_v63 }
 0x129   :  { %1008 = vst [vmem:[%s1901_s10 + $0x1] sm:$0x1] %v1007_v50  ;;  %1059 = vadd.xlane.f32.xlu1 %v1403_v36 }
 0x12a   :  { %v985_v51 = vadd.f32 %v984_v24, %v983_v42  ;;  %v1028_v52 = vrot.slane %v1027_v49, 1 }
 0x12c   :  { %986 = vst [vmem:[%s1901_s10] sm:$0x1] %v985_v51  ;;  %v1029_v21 = vadd.f32 %v1028_v52, %v1027_v49  ;;  %1057 = vadd.xlane.f32.xlu0 %v1393_v4 }
 0x12d   :  { %1108 = vadd.xlane.f32.xlu1 %v1399_v53 }
 0x12e   :  { %1030 = vst [vmem:[%s1901_s10 + $0x2] sm:$0x1] %v1029_v21 }
 0x130   :  { %1061 = vadd.xlane.f32.xlu0 %v1401_v29 }
 0x134   :  { %1110 = vadd.xlane.f32.xlu0 %v1395_v8 }
 0x181   :  { %v1083_v28 = vpop.xlane.xlu0 %1082 }
 0x182   :  { %v1081_v17 = vpop.xlane.xlu1 %1080 }
 0x185   :  { %v1087_v54 = vpop.xlane.xlu0 %1086 }
 0x186   :  { %v1034_v55 = vpop.xlane.xlu1 %1033 }
 0x187   :  { %1065 = vst.msk [vmem:[%s1902_s11 + $0x8] sm:$0xff] %vm1063_vm5, %v1034_v55 }
 0x188   :  { %1114 = vst.msk [vmem:[%s1902_s11 + $0x8] sm:$0xff] %vm1112_vm6, %v1083_v28 }
 0x189   :  { %v1032_v56 = vpop.xlane.xlu0 %1031 }
 0x18a   :  { %1064 = vst.msk [vmem:[%s1902_s11] sm:$0xff] %vm1063_vm5, %v1032_v56  ;;  %v1085_v25 = vpop.xlane.xlu1 %1084 }
 0x18b   :  { %1113 = vst.msk [vmem:[%s1902_s11] sm:$0xff] %vm1112_vm6, %v1081_v17 }
 0x18d   :  { %v1038_v18 = vpop.xlane.xlu0 %1037 }
 0x18e   :  { %1067 = vst.msk [vmem:[%s1902_s11 + $0x18] sm:$0xff] %vm1063_vm5, %v1038_v18  ;;  %v1089_v57 = vpop.xlane.xlu1 %1088 }
 0x18f   :  { %1116 = vst.msk [vmem:[%s1902_s11 + $0x18] sm:$0xff] %vm1112_vm6, %v1087_v54 }
 0x191   :  { %v1091_v31 = vpop.xlane.xlu0 %1090 }
 0x192   :  { %v1040_v26 = vpop.xlane.xlu1 %1039 }
 0x193   :  { %1068 = vst.msk [vmem:[%s1902_s11 + $0x20] sm:$0xff] %vm1063_vm5, %v1040_v26 }
 0x194   :  { %1117 = vst.msk [vmem:[%s1902_s11 + $0x20] sm:$0xff] %vm1112_vm6, %v1089_v57 }
 0x195   :  { %v1036_v58 = vpop.xlane.xlu0 %1035 }
 0x196   :  { %1066 = vst.msk [vmem:[%s1902_s11 + $0x10] sm:$0xff] %vm1063_vm5, %v1036_v58  ;;  %v1093_v59 = vpop.xlane.xlu1 %1092 }
 0x197   :  { %1115 = vst.msk [vmem:[%s1902_s11 + $0x10] sm:$0xff] %vm1112_vm6, %v1085_v25 }
 0x199   :  { %v1042_v60 = vpop.xlane.xlu0 %1041 }
 0x19a   :  { %1069 = vst.msk [vmem:[%s1902_s11 + $0x28] sm:$0xff] %vm1063_vm5, %v1042_v60  ;;  %v1044_v61 = vpop.xlane.xlu1 %1043 }
 0x19b   :  { %1118 = vst.msk [vmem:[%s1902_s11 + $0x28] sm:$0xff] %vm1112_vm6, %v1091_v31 }
 0x19c   :  { %1070 = vst.msk [vmem:[%s1902_s11 + $0x30] sm:$0xff] %vm1063_vm5, %v1044_v61 }
 0x19d   :  { %1119 = vst.msk [vmem:[%s1902_s11 + $0x30] sm:$0xff] %vm1112_vm6, %v1093_v59  ;;  %v1095_v62 = vpop.xlane.xlu0 %1094 }
 0x19e   :  { %v1097_v63 = vpop.xlane.xlu1 %1096 }
 0x1a1   :  { %v1046_v1 = vpop.xlane.xlu0 %1045 }
 0x1a2   :  { %1071 = vst.msk [vmem:[%s1902_s11 + $0x38] sm:$0xff] %vm1063_vm5, %v1046_v1  ;;  %v1048_v35 = vpop.xlane.xlu1 %1047 }
 0x1a3   :  { %1120 = vst.msk [vmem:[%s1902_s11 + $0x38] sm:$0xff] %vm1112_vm6, %v1095_v62 }
 0x1a4   :  { %1072 = vst.msk [vmem:[%s1902_s11 + $0x40] sm:$0xff] %vm1063_vm5, %v1048_v35 }
 0x1a5   :  { %1121 = vst.msk [vmem:[%s1902_s11 + $0x40] sm:$0xff] %vm1112_vm6, %v1097_v63  ;;  %v1099_v44 = vpop.xlane.xlu0 %1098 }
 0x1a6   :  { %v1101_v2 = vpop.xlane.xlu1 %1100 }
 0x1a9   :  { %v1050_v3 = vpop.xlane.xlu0 %1049 }
 0x1aa   :  { %1073 = vst.msk [vmem:[%s1902_s11 + $0x48] sm:$0xff] %vm1063_vm5, %v1050_v3  ;;  %v1052_v4 = vpop.xlane.xlu1 %1051 }
 0x1ab   :  { %1122 = vst.msk [vmem:[%s1902_s11 + $0x48] sm:$0xff] %vm1112_vm6, %v1099_v44 }
 0x1ac   :  { %1074 = vst.msk [vmem:[%s1902_s11 + $0x50] sm:$0xff] %vm1063_vm5, %v1052_v4 }
 0x1ad   :  { %1123 = vst.msk [vmem:[%s1902_s11 + $0x50] sm:$0xff] %vm1112_vm6, %v1101_v2  ;;  %v1103_v5 = vpop.xlane.xlu0 %1102 }
 0x1ae   :  { %v1105_v6 = vpop.xlane.xlu1 %1104 }
 0x1b1   :  { %v1054_v7 = vpop.xlane.xlu0 %1053 }
 0x1b2   :  { %1075 = vst.msk [vmem:[%s1902_s11 + $0x58] sm:$0xff] %vm1063_vm5, %v1054_v7  ;;  %v1056_v8 = vpop.xlane.xlu1 %1055 }
 0x1b3   :  { %1124 = vst.msk [vmem:[%s1902_s11 + $0x58] sm:$0xff] %vm1112_vm6, %v1103_v5 }
 0x1b4   :  { %1076 = vst.msk [vmem:[%s1902_s11 + $0x60] sm:$0xff] %vm1063_vm5, %v1056_v8 }
 0x1b5   :  { %1125 = vst.msk [vmem:[%s1902_s11 + $0x60] sm:$0xff] %vm1112_vm6, %v1105_v6  ;;  %v1107_v9 = vpop.xlane.xlu0 %1106 }
 0x1b6   :  { %v1060_v11 = vpop.xlane.xlu1 %1059 }
 0x1b7   :  { %1078 = vst.msk [vmem:[%s1902_s11 + $0x70] sm:$0xff] %vm1063_vm5, %v1060_v11 }
 0x1b9   :  { %v1058_v12 = vpop.xlane.xlu0 %1057 }
 0x1ba   :  { %1077 = vst.msk [vmem:[%s1902_s11 + $0x68] sm:$0xff] %vm1063_vm5, %v1058_v12  ;;  %v1109_v13 = vpop.xlane.xlu1 %1108 }
 0x1bb   :  { %1126 = vst.msk [vmem:[%s1902_s11 + $0x68] sm:$0xff] %vm1112_vm6, %v1107_v9  ;;  %1127 = vst.msk [vmem:[%s1902_s11 + $0x70] sm:$0xff] %vm1112_vm6, %v1109_v13 }
 0x1bd   :  { %v1062_v53 = vpop.xlane.xlu0 %1061 }
 0x1be   :  { %1079 = vst.msk [vmem:[%s1902_s11 + $0x78] sm:$0xff] %vm1063_vm5, %v1062_v53 }
 0x1c1   :  { %v1111_v14 = vpop.xlane.xlu0 %1110 }
 0x1c2   :  { %1128 = vst.msk [vmem:[%s1902_s11 + $0x78] sm:$0xff] %vm1112_vm6, %v1111_v14 }

</bundles_post_ra>
